<compile_context>
chip_gen: v7x
topology: tpu7x:2x2x1
jax: 0.10.0
libtpu: 0.0.40
codegen_flags: <defaults>
</compile_context>

<pallas_src>
import jax
import jax.numpy as jnp
from jax.experimental import pallas as pl
from jax.experimental.pallas import tpu as pltpu

NUM_NEURON = 120
IN_FEATURES = 5
OUT_FEATURES = 4
EPS = 1e-5

PAD = 128        # hidden feature width, padded 120 -> 128 (lane-aligned)
IN_PAD = 8       # input features padded 5 -> 8   (narrow, == full array dim)
OUT_PAD = 8      # output features padded 4 -> 8  (narrow, == full array dim)
NUM_MID = 5      # lfb, fblfb_a, fblfb_b, fb, fbl


def _leaky(x):
    # LeakyReLU(negative_slope=0.1); max form saves a select on the VPU.
    return jnp.maximum(x, 0.1 * x)


# --------------------------------------------------------------------------
# Kernel
# --------------------------------------------------------------------------
def i_nn_kernel(x_ref, w0_ref, wm_ref, wl_ref, b0_ref, bm_ref, bl_ref, o_ref):
    # x_ref : (TM, 8)        f32   -- input rows, features zero-padded 5 -> 8
    # w0_ref: (8, 128)       bf16  -- BN-folded layer-0 weight
    # wm_ref: (5, 128, 128)  bf16  -- BN-folded hidden-layer weight stack
    # wl_ref: (128, 8)       bf16  -- collapsed ff weight (4 valid out cols)
    # b0_ref: (1, 128)       f32
    # bm_ref: (5, 1, 128)    f32
    # bl_ref: (1, 8)         f32
    # o_ref : (TM, 8)        f32   -- narrow output (cols 4..7 == 0)

    def lin_mid(v, i):
        # bf16 MXU inputs, f32 accumulation + f32 bias, one cast per layer.
        acc = jnp.dot(v, wm_ref[i], preferred_element_type=jnp.float32)
        return (acc + bm_ref[i]).astype(jnp.bfloat16)

    x = x_ref[...].astype(jnp.bfloat16)

    # ifb: Linear(5,N) + BN (folded)
    h = (jnp.dot(x, w0_ref[...], preferred_element_type=jnp.float32)
         + b0_ref[...]).astype(jnp.bfloat16)

    # lfb: LeakyReLU, Linear, BN (folded) ; + residual ; LeakyReLU
    res = h
    h = _leaky(lin_mid(_leaky(h), 0) + res)

    # fblfb: Linear+BN, LeakyReLU, Linear+BN (folded) ; + residual ; LeakyReLU
    res = h
    t = lin_mid(h, 1)
    h = _leaky(lin_mid(_leaky(t), 2) + res)

    # fb: Linear + BN (folded) ; + residual ; LeakyReLU
    res = h
    h = _leaky(lin_mid(h, 3) + res)

    # fbl: Linear + BN (folded) + LeakyReLU ; + residual (no trailing leaky)
    res = h
    h = _leaky(lin_mid(h, 4)) + res

    # ff: three Linears collapsed into one, narrow (TM, 8) result
    o_ref[...] = (jnp.dot(h, wl_ref[...], preferred_element_type=jnp.float32)
                  + bl_ref[...]).astype(o_ref.dtype)


# --------------------------------------------------------------------------
# Host-side parameter construction / packing
# --------------------------------------------------------------------------
def init_raw_params(key, n=NUM_NEURON):
    """Raw (unfolded) params mirroring the PyTorch module (eval-mode BN)."""
    keys = iter(jax.random.split(key, 64))

    def linear(fin, fout):
        k1, k2 = next(keys), next(keys)
        bound = 1.0 / (fin ** 0.5)
        w = jax.random.uniform(k1, (fin, fout), jnp.float32, -bound, bound)
        b = jax.random.uniform(k2, (1, fout), jnp.float32, -bound, bound)
        return w, b

    def batchnorm(f):
        k1, k2 = next(keys), next(keys)
        gamma = jnp.ones((1, f), jnp.float32)
        beta = jnp.zeros((1, f), jnp.float32)
        mean = 0.1 * jax.random.normal(k1, (1, f), jnp.float32)
        var = 1.0 + 0.1 * jnp.abs(jax.random.normal(k2, (1, f), jnp.float32))
        return gamma, beta, mean, var

    return {
        "ifb": (linear(IN_FEATURES, n), batchnorm(n)),
        "lfb": (linear(n, n), batchnorm(n)),
        "fblfb_a": (linear(n, n), batchnorm(n)),
        "fblfb_b": (linear(n, n), batchnorm(n)),
        "fb": (linear(n, n), batchnorm(n)),
        "fbl": (linear(n, n), batchnorm(n)),
        "ff1": linear(n, n),
        "ff2": linear(n, n),
        "ff3": linear(n, OUT_FEATURES),
    }


def pack_params(raw):
    """Fold eval-mode BN into Linears, collapse the ff block, pad, pack."""
    # TODO(synk): training-mode BatchNorm (batch statistics + running-stat
    # updates) has no equivalent here; this packing is inference-only.

    def fold(lin_wb, bn_p):
        (w, b), (gamma, beta, mean, var) = lin_wb, bn_p
        s = gamma / jnp.sqrt(var + EPS)
        t = beta - mean * s
        return w * s, b * s + t

    def pad_to(a, rows, cols):
        return jnp.pad(a, ((0, rows - a.shape[0]), (0, cols - a.shape[1])))

    # Layer 0 (ifb): 5 -> 8 input pad, 120 -> 128 output pad.
    w0, b0 = fold(*raw["ifb"])
    w0 = pad_to(w0, IN_PAD, PAD)
    b0 = pad_to(b0, 1, PAD)

    # Hidden layers: lfb, fblfb_a, fblfb_b, fb, fbl.
    mids = []
    for name in ("lfb", "fblfb_a", "fblfb_b", "fb", "fbl"):
        w, b = fold(*raw[name])
        mids.append((pad_to(w, PAD, PAD), pad_to(b, 1, PAD)))
    wm = jnp.stack([w for w, _ in mids])   # (5, 128, 128)
    bm = jnp.stack([b for _, b in mids])   # (5, 1, 128)

    # Collapse ff = Linear -> Linear -> Linear (no activations between).
    (w5, b5), (w6, b6), (w7, b7) = raw["ff1"], raw["ff2"], raw["ff3"]
    wl = w5 @ w6 @ w7
    bl = (b5 @ w6 + b6) @ w7 + b7
    wl = pad_to(wl, PAD, OUT_PAD)          # (128, 8)
    bl = pad_to(bl, 1, OUT_PAD)            # (1, 8)

    return dict(
        w0=w0.astype(jnp.bfloat16),
        wm=wm.astype(jnp.bfloat16),
        wl=wl.astype(jnp.bfloat16),
        b0=b0.astype(jnp.float32),
        bm=bm.astype(jnp.float32),
        bl=bl.astype(jnp.float32),
    )


# --------------------------------------------------------------------------
# Pallas wrapper
# --------------------------------------------------------------------------
def _round_up(x, m):
    return (x + m - 1) // m * m


def _tile_rows(batch, block_m):
    """Pick (tm, padded rows): minimal padding, >=2 grid steps when possible."""
    rows = _round_up(batch, 8)
    n_steps = 1 if rows < 16 else max(2, -(-rows // block_m))
    tm = _round_up(-(-rows // n_steps), 8)
    return tm, tm * n_steps


def i_nn_forward(x, params, *, block_m=512):
    batch = x.shape[0]
    tm, batch_pad = _tile_rows(batch, block_m)

    # Narrow pad: rows up to batch_pad, features 5 -> 8 only.
    xp = jnp.pad(x.astype(jnp.float32),
                 ((0, batch_pad - batch), (0, IN_PAD - x.shape[1])))

    out = pl.pallas_call(
        i_nn_kernel,
        out_shape=jax.ShapeDtypeStruct((batch_pad, OUT_PAD), jnp.float32),
        grid=(batch_pad // tm,),
        in_specs=[
            pl.BlockSpec((tm, IN_PAD), lambda i: (i, 0)),           # x tiles
            pl.BlockSpec((IN_PAD, PAD), lambda i: (0, 0)),          # w0 (resident)
            pl.BlockSpec((NUM_MID, PAD, PAD), lambda i: (0, 0, 0)),  # wm (resident)
            pl.BlockSpec((PAD, OUT_PAD), lambda i: (0, 0)),          # wl (resident)
            pl.BlockSpec((1, PAD), lambda i: (0, 0)),                # b0 (resident)
            pl.BlockSpec((NUM_MID, 1, PAD), lambda i: (0, 0, 0)),    # bm (resident)
            pl.BlockSpec((1, OUT_PAD), lambda i: (0, 0)),            # bl (resident)
        ],
        out_specs=pl.BlockSpec((tm, OUT_PAD), lambda i: (i, 0)),
        compiler_params=pltpu.CompilerParams(
            dimension_semantics=("parallel",)),
    )(xp, params["w0"], params["wm"], params["wl"],
      params["b0"], params["bm"], params["bl"])

    return out[:batch, :OUT_FEATURES]


# --------------------------------------------------------------------------
# References
# --------------------------------------------------------------------------
def i_nn_reference_packed(x, params):
    """Same math as the kernel (folded, collapsed, bf16 activations)."""
    xp = jnp.pad(x.astype(jnp.float32), ((0, 0), (0, IN_PAD - x.shape[1])))

    def lin_mid(v, i):
        acc = jnp.dot(v, params["wm"][i], preferred_element_type=jnp.float32)
        return (acc + params["bm"][i]).astype(jnp.bfloat16)

    h = (jnp.dot(xp.astype(jnp.bfloat16), params["w0"],
                 preferred_element_type=jnp.float32)
         + params["b0"]).astype(jnp.bfloat16)
    res = h
    h = _leaky(lin_mid(_leaky(h), 0) + res)
    res = h
    t = lin_mid(h, 1)
    h = _leaky(lin_mid(_leaky(t), 2) + res)
    res = h
    h = _leaky(lin_mid(h, 3) + res)
    res = h
    h = _leaky(lin_mid(h, 4)) + res
    out = (jnp.dot(h, params["wl"], preferred_element_type=jnp.float32)
           + params["bl"])
    return out[:, :OUT_FEATURES]


def i_nn_reference_f32(x, raw):
    """Original module math in f32 (unfolded eval-mode BN, 3 separate ff Linears)."""

    def lin(h, wb):
        w, b = wb
        return h @ w + b

    def bn(h, p):
        gamma, beta, mean, var = p
        return gamma * (h - mean) / jnp.sqrt(var + EPS) + beta

    h = bn(lin(x, raw["ifb"][0]), raw["ifb"][1])
    res = h
    h = _leaky(bn(lin(_leaky(h), raw["lfb"][0]), raw["lfb"][1]) + res)
    res = h
    t = bn(lin(h, raw["fblfb_a"][0]), raw["fblfb_a"][1])
    t = bn(lin(_leaky(t), raw["fblfb_b"][0]), raw["fblfb_b"][1])
    h = _leaky(t + res)
    res = h
    h = _leaky(bn(lin(h, raw["fb"][0]), raw["fb"][1]) + res)
    res = h
    h = _leaky(bn(lin(h, raw["fbl"][0]), raw["fbl"][1])) + res
    h = lin(h, raw["ff1"])
    h = lin(h, raw["ff2"])
    h = lin(h, raw["ff3"])
    return h


# --------------------------------------------------------------------------
if __name__ == "__main__":
    key = jax.random.PRNGKey(0)
    k_x, k_p = jax.random.split(key)

    # batch=20 exercises row padding (20 -> 32) and a 2-step "parallel" grid.
    batch = 20
    x = jax.random.normal(k_x, (batch, IN_FEATURES), dtype=jnp.float32)
    raw = init_raw_params(k_p)
    params = pack_params(raw)

    out = i_nn_forward(x, params)
    out = jax.block_until_ready(out)
    assert out.shape == (batch, OUT_FEATURES)

    # Implementation check: identical math (folded/collapsed, bf16 chain).
    ref_packed = i_nn_reference_packed(x, params)
    assert jnp.allclose(out, ref_packed, atol=2e-2, rtol=2e-2), float(
        jnp.max(jnp.abs(out - ref_packed)))

    # Precision sanity check vs. the original f32, unfolded forward pass
    # (loose tolerance: bf16 weights + bf16 activation chain).
    ref_f32 = i_nn_reference_f32(x, raw)
    assert jnp.allclose(out, ref_f32, atol=1e-1, rtol=1e-1), float(
        jnp.max(jnp.abs(out - ref_f32)))

    print("KERNEL_OK")
</pallas_src>

<mosaic_0001>
module attributes {stable_mosaic.version = 11 : i64} {
  func.func @i_nn_kernel(%arg0: i32, %arg1: memref<16x8xf32, #tpu.memory_space<vmem>>, %arg2: memref<8x128xbf16, #tpu.memory_space<vmem>>, %arg3: memref<5x128x128xbf16, #tpu.memory_space<vmem>>, %arg4: memref<128x8xbf16, #tpu.memory_space<vmem>>, %arg5: memref<1x128xf32, #tpu.memory_space<vmem>>, %arg6: memref<5x1x128xf32, #tpu.memory_space<vmem>>, %arg7: memref<1x8xf32, #tpu.memory_space<vmem>>, %arg8: memref<16x8xf32, #tpu.memory_space<vmem>>) attributes {dimension_semantics = [#tpu.dimension_semantics<parallel>], iteration_bounds = array<i64: 2>, scalar_prefetch = 0 : i64, scratch_operands = 0 : i64, tpu.core_type = #tpu.core_type<tc>, window_params = [{transform_indices = @transform_0, window_bounds = array<i64: 16, 8>}, {pipeline_mode = #tpu.pipeline_mode<synchronous>, transform_indices = @transform_1, window_bounds = array<i64: 8, 128>}, {pipeline_mode = #tpu.pipeline_mode<synchronous>, transform_indices = @transform_2, window_bounds = array<i64: 5, 128, 128>}, {pipeline_mode = #tpu.pipeline_mode<synchronous>, transform_indices = @transform_3, window_bounds = array<i64: 128, 8>}, {pipeline_mode = #tpu.pipeline_mode<synchronous>, transform_indices = @transform_4, window_bounds = array<i64: 1, 128>}, {pipeline_mode = #tpu.pipeline_mode<synchronous>, transform_indices = @transform_5, window_bounds = array<i64: 5, 1, 128>}, {pipeline_mode = #tpu.pipeline_mode<synchronous>, transform_indices = @transform_6, window_bounds = array<i64: 1, 8>}, {transform_indices = @transform_7, window_bounds = array<i64: 16, 8>}]} {
    %c0 = arith.constant 0 : index
    %c0_0 = arith.constant 0 : index
    %0 = vector.load %arg1[%c0, %c0_0] : memref<16x8xf32, #tpu.memory_space<vmem>>, vector<16x8xf32>
    %1 = arith.truncf %0 : vector<16x8xf32> to vector<16x8xbf16>
    %c0_1 = arith.constant 0 : index
    %c0_2 = arith.constant 0 : index
    %2 = vector.load %arg2[%c0_1, %c0_2] : memref<8x128xbf16, #tpu.memory_space<vmem>>, vector<8x128xbf16>
    %cst = arith.constant dense<0.000000e+00> : vector<16x128xf32>
    %3 = tpu.matmul %1, %2, %cst {dimension_numbers = #tpu.dot_dimension_numbers<[1], [0], [0], [1], [0, 0, 1, 1], [], []>} : vector<16x8xbf16>, vector<8x128xbf16>, vector<16x128xf32> -> vector<16x128xf32>
    %c0_3 = arith.constant 0 : index
    %c0_4 = arith.constant 0 : index
    %4 = vector.load %arg5[%c0_3, %c0_4] : memref<1x128xf32, #tpu.memory_space<vmem>>, vector<1x128xf32>
    %5 = vector.broadcast %4 : vector<1x128xf32> to vector<16x128xf32>
    %6 = arith.addf %3, %5 : vector<16x128xf32>
    %7 = arith.truncf %6 : vector<16x128xf32> to vector<16x128xbf16>
    %cst_5 = arith.constant 1.000980e-01 : bf16
    %8 = vector.broadcast %cst_5 : bf16 to vector<16x128xbf16>
    %9 = arith.mulf %8, %7 : vector<16x128xbf16>
    %10 = arith.maximumf %7, %9 : vector<16x128xbf16>
    %c0_6 = arith.constant 0 : index
    %c0_7 = arith.constant 0 : index
    %c0_8 = arith.constant 0 : index
    %11 = vector.load %arg3[%c0_6, %c0_7, %c0_8] : memref<5x128x128xbf16, #tpu.memory_space<vmem>>, vector<1x128x128xbf16>
    %12 = vector.shape_cast %11 : vector<1x128x128xbf16> to vector<128x128xbf16>
    %cst_9 = arith.constant dense<0.000000e+00> : vector<16x128xf32>
    %13 = tpu.matmul %10, %12, %cst_9 {dimension_numbers = #tpu.dot_dimension_numbers<[1], [0], [0], [1], [0, 0, 1, 1], [], []>} : vector<16x128xbf16>, vector<128x128xbf16>, vector<16x128xf32> -> vector<16x128xf32>
    %c0_10 = arith.constant 0 : index
    %c0_11 = arith.constant 0 : index
    %c0_12 = arith.constant 0 : index
    %14 = vector.load %arg6[%c0_10, %c0_11, %c0_12] : memref<5x1x128xf32, #tpu.memory_space<vmem>>, vector<1x1x128xf32>
    %15 = vector.shape_cast %14 : vector<1x1x128xf32> to vector<1x128xf32>
    %16 = vector.broadcast %15 : vector<1x128xf32> to vector<16x128xf32>
    %17 = arith.addf %13, %16 : vector<16x128xf32>
    %18 = arith.truncf %17 : vector<16x128xf32> to vector<16x128xbf16>
    %19 = arith.addf %18, %7 : vector<16x128xbf16>
    %cst_13 = arith.constant 1.000980e-01 : bf16
    %20 = vector.broadcast %cst_13 : bf16 to vector<16x128xbf16>
    %21 = arith.mulf %20, %19 : vector<16x128xbf16>
    %22 = arith.maximumf %19, %21 : vector<16x128xbf16>
    %c1 = arith.constant 1 : index
    %c0_14 = arith.constant 0 : index
    %c0_15 = arith.constant 0 : index
    %23 = vector.load %arg3[%c1, %c0_14, %c0_15] : memref<5x128x128xbf16, #tpu.memory_space<vmem>>, vector<1x128x128xbf16>
    %24 = vector.shape_cast %23 : vector<1x128x128xbf16> to vector<128x128xbf16>
    %cst_16 = arith.constant dense<0.000000e+00> : vector<16x128xf32>
    %25 = tpu.matmul %22, %24, %cst_16 {dimension_numbers = #tpu.dot_dimension_numbers<[1], [0], [0], [1], [0, 0, 1, 1], [], []>} : vector<16x128xbf16>, vector<128x128xbf16>, vector<16x128xf32> -> vector<16x128xf32>
    %c1_17 = arith.constant 1 : index
    %c0_18 = arith.constant 0 : index
    %c0_19 = arith.constant 0 : index
    %26 = vector.load %arg6[%c1_17, %c0_18, %c0_19] : memref<5x1x128xf32, #tpu.memory_space<vmem>>, vector<1x1x128xf32>
    %27 = vector.shape_cast %26 : vector<1x1x128xf32> to vector<1x128xf32>
    %28 = vector.broadcast %27 : vector<1x128xf32> to vector<16x128xf32>
    %29 = arith.addf %25, %28 : vector<16x128xf32>
    %30 = arith.truncf %29 : vector<16x128xf32> to vector<16x128xbf16>
    %cst_20 = arith.constant 1.000980e-01 : bf16
    %31 = vector.broadcast %cst_20 : bf16 to vector<16x128xbf16>
    %32 = arith.mulf %31, %30 : vector<16x128xbf16>
    %33 = arith.maximumf %30, %32 : vector<16x128xbf16>
    %c2 = arith.constant 2 : index
    %c0_21 = arith.constant 0 : index
    %c0_22 = arith.constant 0 : index
    %34 = vector.load %arg3[%c2, %c0_21, %c0_22] : memref<5x128x128xbf16, #tpu.memory_space<vmem>>, vector<1x128x128xbf16>
    %35 = vector.shape_cast %34 : vector<1x128x128xbf16> to vector<128x128xbf16>
    %cst_23 = arith.constant dense<0.000000e+00> : vector<16x128xf32>
    %36 = tpu.matmul %33, %35, %cst_23 {dimension_numbers = #tpu.dot_dimension_numbers<[1], [0], [0], [1], [0, 0, 1, 1], [], []>} : vector<16x128xbf16>, vector<128x128xbf16>, vector<16x128xf32> -> vector<16x128xf32>
    %c2_24 = arith.constant 2 : index
    %c0_25 = arith.constant 0 : index
    %c0_26 = arith.constant 0 : index
    %37 = vector.load %arg6[%c2_24, %c0_25, %c0_26] : memref<5x1x128xf32, #tpu.memory_space<vmem>>, vector<1x1x128xf32>
    %38 = vector.shape_cast %37 : vector<1x1x128xf32> to vector<1x128xf32>
    %39 = vector.broadcast %38 : vector<1x128xf32> to vector<16x128xf32>
    %40 = arith.addf %36, %39 : vector<16x128xf32>
    %41 = arith.truncf %40 : vector<16x128xf32> to vector<16x128xbf16>
    %42 = arith.addf %41, %22 : vector<16x128xbf16>
    %cst_27 = arith.constant 1.000980e-01 : bf16
    %43 = vector.broadcast %cst_27 : bf16 to vector<16x128xbf16>
    %44 = arith.mulf %43, %42 : vector<16x128xbf16>
    %45 = arith.maximumf %42, %44 : vector<16x128xbf16>
    %c3 = arith.constant 3 : index
    %c0_28 = arith.constant 0 : index
    %c0_29 = arith.constant 0 : index
    %46 = vector.load %arg3[%c3, %c0_28, %c0_29] : memref<5x128x128xbf16, #tpu.memory_space<vmem>>, vector<1x128x128xbf16>
    %47 = vector.shape_cast %46 : vector<1x128x128xbf16> to vector<128x128xbf16>
    %cst_30 = arith.constant dense<0.000000e+00> : vector<16x128xf32>
    %48 = tpu.matmul %45, %47, %cst_30 {dimension_numbers = #tpu.dot_dimension_numbers<[1], [0], [0], [1], [0, 0, 1, 1], [], []>} : vector<16x128xbf16>, vector<128x128xbf16>, vector<16x128xf32> -> vector<16x128xf32>
    %c3_31 = arith.constant 3 : index
    %c0_32 = arith.constant 0 : index
    %c0_33 = arith.constant 0 : index
    %49 = vector.load %arg6[%c3_31, %c0_32, %c0_33] : memref<5x1x128xf32, #tpu.memory_space<vmem>>, vector<1x1x128xf32>
    %50 = vector.shape_cast %49 : vector<1x1x128xf32> to vector<1x128xf32>
    %51 = vector.broadcast %50 : vector<1x128xf32> to vector<16x128xf32>
    %52 = arith.addf %48, %51 : vector<16x128xf32>
    %53 = arith.truncf %52 : vector<16x128xf32> to vector<16x128xbf16>
    %54 = arith.addf %53, %45 : vector<16x128xbf16>
    %cst_34 = arith.constant 1.000980e-01 : bf16
    %55 = vector.broadcast %cst_34 : bf16 to vector<16x128xbf16>
    %56 = arith.mulf %55, %54 : vector<16x128xbf16>
    %57 = arith.maximumf %54, %56 : vector<16x128xbf16>
    %c4 = arith.constant 4 : index
    %c0_35 = arith.constant 0 : index
    %c0_36 = arith.constant 0 : index
    %58 = vector.load %arg3[%c4, %c0_35, %c0_36] : memref<5x128x128xbf16, #tpu.memory_space<vmem>>, vector<1x128x128xbf16>
    %59 = vector.shape_cast %58 : vector<1x128x128xbf16> to vector<128x128xbf16>
    %cst_37 = arith.constant dense<0.000000e+00> : vector<16x128xf32>
    %60 = tpu.matmul %57, %59, %cst_37 {dimension_numbers = #tpu.dot_dimension_numbers<[1], [0], [0], [1], [0, 0, 1, 1], [], []>} : vector<16x128xbf16>, vector<128x128xbf16>, vector<16x128xf32> -> vector<16x128xf32>
    %c4_38 = arith.constant 4 : index
    %c0_39 = arith.constant 0 : index
    %c0_40 = arith.constant 0 : index
    %61 = vector.load %arg6[%c4_38, %c0_39, %c0_40] : memref<5x1x128xf32, #tpu.memory_space<vmem>>, vector<1x1x128xf32>
    %62 = vector.shape_cast %61 : vector<1x1x128xf32> to vector<1x128xf32>
    %63 = vector.broadcast %62 : vector<1x128xf32> to vector<16x128xf32>
    %64 = arith.addf %60, %63 : vector<16x128xf32>
    %65 = arith.truncf %64 : vector<16x128xf32> to vector<16x128xbf16>
    %cst_41 = arith.constant 1.000980e-01 : bf16
    %66 = vector.broadcast %cst_41 : bf16 to vector<16x128xbf16>
    %67 = arith.mulf %66, %65 : vector<16x128xbf16>
    %68 = arith.maximumf %65, %67 : vector<16x128xbf16>
    %69 = arith.addf %68, %57 : vector<16x128xbf16>
    %c0_42 = arith.constant 0 : index
    %c0_43 = arith.constant 0 : index
    %70 = vector.load %arg4[%c0_42, %c0_43] : memref<128x8xbf16, #tpu.memory_space<vmem>>, vector<128x8xbf16>
    %cst_44 = arith.constant dense<0.000000e+00> : vector<16x8xf32>
    %71 = tpu.matmul %69, %70, %cst_44 {dimension_numbers = #tpu.dot_dimension_numbers<[1], [0], [0], [1], [0, 0, 1, 1], [], []>} : vector<16x128xbf16>, vector<128x8xbf16>, vector<16x8xf32> -> vector<16x8xf32>
    %c0_45 = arith.constant 0 : index
    %c0_46 = arith.constant 0 : index
    %72 = vector.load %arg7[%c0_45, %c0_46] : memref<1x8xf32, #tpu.memory_space<vmem>>, vector<1x8xf32>
    %73 = vector.broadcast %72 : vector<1x8xf32> to vector<16x8xf32>
    %74 = arith.addf %71, %73 : vector<16x8xf32>
    %c0_47 = arith.constant 0 : index
    %c0_48 = arith.constant 0 : index
    %75 = vector.load %arg8[%c0_47, %c0_48] : memref<16x8xf32, #tpu.memory_space<vmem>>, vector<16x8xf32>
    tpu.vector_store %arg8[%c0_47, %c0_48], %74 {strides = array<i32>} : memref<16x8xf32, #tpu.memory_space<vmem>>, vector<16x8xf32>,
    return
  }
  func.func @transform_0(%arg0: i32) -> (i32, i32) {
    %c0_i32 = arith.constant 0 : i32
    %c0_i32_0 = arith.constant 0 : i32
    return %arg0, %c0_i32 : i32, i32
  }
  func.func @transform_1(%arg0: i32) -> (i32, i32) {
    %c0_i32 = arith.constant 0 : i32
    %c0_i32_0 = arith.constant 0 : i32
    %c0_i32_1 = arith.constant 0 : i32
    return %c0_i32, %c0_i32_0 : i32, i32
  }
  func.func @transform_2(%arg0: i32) -> (i32, i32, i32) {
    %c0_i32 = arith.constant 0 : i32
    %c0_i32_0 = arith.constant 0 : i32
    %c0_i32_1 = arith.constant 0 : i32
    %c0_i32_2 = arith.constant 0 : i32
    return %c0_i32, %c0_i32_0, %c0_i32_1 : i32, i32, i32
  }
  func.func @transform_3(%arg0: i32) -> (i32, i32) {
    %c0_i32 = arith.constant 0 : i32
    %c0_i32_0 = arith.constant 0 : i32
    %c0_i32_1 = arith.constant 0 : i32
    return %c0_i32, %c0_i32_0 : i32, i32
  }
  func.func @transform_4(%arg0: i32) -> (i32, i32) {
    %c0_i32 = arith.constant 0 : i32
    %c0_i32_0 = arith.constant 0 : i32
    %c0_i32_1 = arith.constant 0 : i32
    return %c0_i32, %c0_i32_0 : i32, i32
  }
  func.func @transform_5(%arg0: i32) -> (i32, i32, i32) {
    %c0_i32 = arith.constant 0 : i32
    %c0_i32_0 = arith.constant 0 : i32
    %c0_i32_1 = arith.constant 0 : i32
    %c0_i32_2 = arith.constant 0 : i32
    return %c0_i32, %c0_i32_0, %c0_i32_1 : i32, i32, i32
  }
  func.func @transform_6(%arg0: i32) -> (i32, i32) {
    %c0_i32 = arith.constant 0 : i32
    %c0_i32_0 = arith.constant 0 : i32
    %c0_i32_1 = arith.constant 0 : i32
    return %c0_i32, %c0_i32_0 : i32, i32
  }
  func.func @transform_7(%arg0: i32) -> (i32, i32) {
    %c0_i32 = arith.constant 0 : i32
    %c0_i32_0 = arith.constant 0 : i32
    return %arg0, %c0_i32 : i32, i32
  }
}

</mosaic_0001>

<bundles_post_ra>
// kernel: tpu_custom_call.1
= control target key start
LH: loop header
LB: loop body
LE: loop exit
PB: predicated region body
PF: predicated region fallthrough
CT: control target
= control target key end

     0   :  { %12 = vsyncpa [#allocation3], 0  ;;  %s1542_s24 = smov 0   ;;  %s1726_s0 = inlined_call_operand.vmem [shape: f32[32,8], index: 0, kind: input, shape index: {}]   ;;  %s1727_s1 = inlined_call_operand.vmem [shape: bf16[8,128], index: 1, kind: input, shape index: {}]   ;;  %s1728_s2 = inlined_call_operand.hbm [shape: bf16[5,128,128], index: 2, kind: input, shape index: {}]   ;;  %s1729_s3 = inlined_call_operand.vmem [shape: bf16[128,8], index: 3, kind: input, shape index: {}]   ;;  %s1730_s4 = inlined_call_operand.vmem [shape: f32[1,128], index: 4, kind: input, shape index: {}]   ;;  %s1731_s5 = inlined_call_operand.vmem [shape: f32[5,1,128], index: 5, kind: input, shape index: {}]   ;;  %s1732_s6 = inlined_call_operand.vmem [shape: f32[1,8], index: 6, kind: input, shape index: {}]   ;;  %s1733_s7 = inlined_call_operand.vmem [shape: f32[32,8], index: 7, kind: output, shape index: {}]  }
   0x1 LB: > { %s1131_s25 = sadd.s32 4294967295, %s1495_s24   ;;  %p1133_p0 = scmp.ge.s32.totalorder %s1495_s24, 1  ;;  %s1495_s24 = sphi %s1542_s24, %s18_s24  }
   0x2   : > { %p201_p1 = scmp.lt.s32.totalorder %s1495_s24, 3  ;;  %s1497_s26 = smov [#allocation2]  }
   0x3   : > { %s216_s27 = sshll.u32 %s1497_s26, 4  ;;  %p1556_p3 = scmp.eq.s32.totalorder %s1131_s25, 0  ;;  %s217_s27 = int_to_ptr.vmem [resolvable:$true] %s216_s27 }
   0x4   : > { %p1550_p2 = pnand %p1133_p0, %p201_p1  ;;  %s1457_s10 = scalar_lea.hbm %s1728_s2, 5120 }
   0x5   : > { %s1738_s29 = scalar_select %p1556_p3, 1, 0 }
   0x6   : > { %s1737_s28 = scalar_select %p1550_p2, 1, 0 }
   0x7   : > { %p1390_p4 = pneg %p1550_p2  ;;  %p1458_p6 = scmp.ne.s32.totalorder %s1728_s2, %s1457_s10 }
   0x8   : > { %p1464_p10 = scmp.lt.u32.totalorder %s1457_s10, %s1728_s2 }
   0x9   : > { %p1564_p5 = pnand %p1556_p3, %p1390_p4 }
   0xb   : > { %p1459_p7 = pneg %p1564_p5 }
   0xd   : > { %p1460_p8 = pnand %p1459_p7, %p1458_p6 }
   0xf   : > { %p1461_p9 = pneg %p1460_p8 }
  0x11   : > { %p1466_p11 = pnand %p1464_p10, %p1461_p9 }
  0x13   : > { %1469 = shalt.err (!%p1466_p11)
}
  0x14   : > { %s1470_s15 = scalar_lea.vmem %s217_s27, 5120  ;;  %p1478_p1 = scmp.lt.s32.totalorder %s217_s27, %s217_s27 }
  0x15   : > { %p1471_p12 = scmp.ne.s32.totalorder %s217_s27, %s1470_s15  ;;  %p1479_p4 = scmp.lt.s32.totalorder %s1470_s15, %s1470_s15 }
  0x17   : > { %p1473_p13 = pnand %p1471_p12, %p1459_p7  ;;  %p1480_p3 = por %p1479_p4, %p1478_p1 }
  0x19   : > { %p1474_p0 = pneg %p1473_p13 }
  0x1b   : > { %p1481_p2 = pnand %p1480_p3, %p1474_p0 }
  0x1d   : > { %1484 = shalt.err (!%p1481_p2)
}
  0x1e   : > { %s1498_s16 = smov 64   ;;  %s1499_s17 = smov 4  }
  0x1f   : > { %1393 = dma.hbm_to_vmem [thread:$0]  (!%p1564_p5), %s1728_s2, 5120, %s217_s27, [#allocation3], %s1498_s16, %s1498_s16, %s1499_s17  }
  0x20   : > { %p1740_p6 = scmp.ne.s32.totalorder %s1737_s28, 0 }
  0x21   : > { %p1741_p8 = scmp.ne.s32.totalorder (!%p1740_p6), %s1738_s29, 0 }
  0x22   : > { %253 = sbr.rel (%p1740_p6) target bundleno = 1608 (0x648), region = 48 }
  0x29   : > { %1490 = dma.done.wait (%p1741_p8), [#allocation3], 5120  }
  0x2a   : > { %1492 = vsyncadd (%p1741_p8), [#allocation3], 4294962176  ;;  %s1138_s20 = sshll.u32 %s1131_s25, 1  ;;  %v1500_v0 = vmov 0.0   ;;  %vm1501_vm0 = vmmov 0   ;;  %vm314_vm1 = vcmask 1043456  }
  0x2b   : > { %1260 = vmatprep.subr.bf16.mxu0 %v1500_v0  ;;  %1262 = vmatprep.mubr.msk.bf16.mxu0 %vm1501_vm0, %v1500_v0  ;;  %p286_p2 = scmp.lt.s32.totalorder %s1138_s20, 3  ;;  %v302_v1 = vld [vmem:[%s1727_s1] sm:$0xf]  ;;  %vm310_vm2 = vcmask 64512   ;;  %v1410_v7 = vld [vmem:[#allocation2 + $0x8] sm:$0xff]   ;;  %v1411_v8 = vld [vmem:[#allocation2 + $0x10] sm:$0xff]  }
  0x2c   : > { %1266 = vmatprep.subr.bf16.mxu1 %v1500_v0  ;;  %1282 = vmatprep.mubr.msk.bf16.mxu1 %vm1501_vm0, %v1500_v0  ;;  %v316_v4 = vsel %vm314_vm1, %v302_v1, 0  ;;  %v1409_v6 = vld [vmem:[#allocation2] sm:$0xff]   ;;  %v1412_v9 = vld [vmem:[#allocation2 + $0x18] sm:$0xff]   ;;  %v1414_v11 = vld [vmem:[#allocation2 + $0x28] sm:$0xff]  }
  0x2d   : > { %s1743_s20 = smov (!%p286_p2, %s1138_s20), 3  ;;  %1261 = vmatpush3.bf16.msra.mxu0 %v316_v4  ;;  %1267 = vmatpush3.bf16.msra.mxu1 %v1409_v6  ;;  %v1413_v10 = vld [vmem:[#allocation2 + $0x20] sm:$0xff]   ;;  %v1415_v12 = vld [vmem:[#allocation2 + $0x30] sm:$0xff]   ;;  %v1416_v13 = vld [vmem:[#allocation2 + $0x38] sm:$0xff]  }
  0x2e   : > { %s1139_s21 = sshll.u32 %s1743_s20, 3  ;;  %1286 = vmatprep.subr.bf16.mxu0 %v1500_v0  ;;  %1268 = vmatprep.subr.bf16.mxu1 %v1500_v0  ;;  %v1417_v14 = vld [vmem:[#allocation2 + $0x40] sm:$0xff]   ;;  %v1418_v15 = vld [vmem:[#allocation2 + $0x48] sm:$0xff]   ;;  %v1419_v16 = vld [vmem:[#allocation2 + $0x50] sm:$0xff]  }
  0x2f   : > { %s289_s25 = scalar_lea.vmem %s1726_s0, %s1139_s21  ;;  %v1420_v17 = vld [vmem:[#allocation2 + $0x58] sm:$0xff]   ;;  %v1421_v18 = vld [vmem:[#allocation2 + $0x60] sm:$0xff]   ;;  %v1422_v29 = vld [vmem:[#allocation2 + $0x68] sm:$0xff]   ;;  %s295_s17 = scalar_lea.vmem %s1733_s7, %s1139_s21 }
  0x30   : > { %v299_v2 = vld [vmem:[%s289_s25] sm:$0xff]  ;;  %v300_v3 = vld [vmem:[%s289_s25 + $0x8] sm:$0xff]  ;;  %v1423_v30 = vld [vmem:[#allocation2 + $0x70] sm:$0xff]  }
  0x31   : > { %v301_v5 = vpack.c.bf16 %v300_v3, %v299_v2  ;;  %1269 = vmatpush3.bf16.msra.mxu1 %v1410_v7  ;;  %v1142_v19 = vld [vmem:[%s1730_s4] ss:$0 sm:$0xff]  ;;  %v1424_v31 = vld [vmem:[#allocation2 + $0x78] sm:$0xff]   ;;  %v1426_v33 = vld [vmem:[#allocation2 + $0x88] sm:$0xff]  }
  0x32   : > { %1270 = vmatprep.subr.bf16.mxu1 %v1500_v0  ;;  %v1425_v32 = vld [vmem:[#allocation2 + $0x80] sm:$0xff]   ;;  %v1427_v34 = vld [vmem:[#allocation2 + $0x90] sm:$0xff]   ;;  %v1428_v35 = vld [vmem:[#allocation2 + $0x98] sm:$0xff]  }
  0x33   : > { %1263 = vmatmul.mubr.msk.bf16.vlgmr.msra.gmra.mrb[0].mxu0 %vm310_vm2, %v301_v5  ;;  %v1429_v36 = vld [vmem:[#allocation2 + $0xa0] sm:$0xff]   ;;  %v1430_v48 = vld [vmem:[#allocation2 + $0xa8] sm:$0xff]   ;;  %v1431_v49 = vld [vmem:[#allocation2 + $0xb0] sm:$0xff]  }
  0x34   : > { %1302 = vmatprep.mubr.msk.bf16.mxu0 %vm1501_vm0, %v1500_v0  ;;  %1287 = vmatpush3.bf16.msra.mxu0 %v1417_v14  ;;  %v1144_v37 = vld [vmem:[%s1731_s5] ss:$0 sm:$0xff]  ;;  %v1432_v50 = vld [vmem:[#allocation2 + $0xb8] sm:$0xff]   ;;  %v1434_v52 = vld [vmem:[#allocation2 + $0xc8] sm:$0xff]  }
  0x35   : > { %1271 = vmatpush3.bf16.msra.mxu1 %v1411_v8  ;;  %1288 = vmatprep.subr.bf16.mxu0 %v1500_v0  ;;  %v1433_v51 = vld [vmem:[#allocation2 + $0xc0] sm:$0xff]   ;;  %v1435_v53 = vld [vmem:[#allocation2 + $0xd0] sm:$0xff]   ;;  %v1436_v54 = vld [vmem:[#allocation2 + $0xd8] sm:$0xff]  }
  0x36   : > { %1272 = vmatprep.subr.bf16.mxu1 %v1500_v0  ;;  %v1437_v55 = vld [vmem:[#allocation2 + $0xe0] sm:$0xff]   ;;  %v1438_v3 = vld [vmem:[#allocation2 + $0xe8] sm:$0xff]   ;;  %v1439_v4 = vld [vmem:[#allocation2 + $0xf0] sm:$0xff]  }
  0x37   : > { %v1154_v56 = vld [vmem:[%s1731_s5 + $0x1] ss:$0 sm:$0xff]  ;;  %v1440_v5 = vld [vmem:[#allocation2 + $0xf8] sm:$0xff]   ;;  %v1442_v7 = vld [vmem:[#allocation2 + $0x108] sm:$0xff]  }
  0x38   : > { %1289 = vmatpush3.bf16.msra.mxu0 %v1418_v15  ;;  %v1441_v6 = vld [vmem:[#allocation2 + $0x100] sm:$0xff]   ;;  %v1443_v8 = vld [vmem:[#allocation2 + $0x110] sm:$0xff]  }
  0x39   : > { %1273 = vmatpush3.bf16.msra.mxu1 %v1412_v9  ;;  %1290 = vmatprep.subr.bf16.mxu0 %v1500_v0  ;;  %v1444_v9 = vld [vmem:[#allocation2 + $0x118] sm:$0xff]  }
  0x3a   : > { %1274 = vmatprep.subr.bf16.mxu1 %v1500_v0 }
  0x3c   : > { %1291 = vmatpush3.bf16.msra.mxu0 %v1419_v16 }
  0x3d   : > { %1275 = vmatpush3.bf16.msra.mxu1 %v1413_v10  ;;  %1292 = vmatprep.subr.bf16.mxu0 %v1500_v0  ;;  %v1445_v10 = vld [vmem:[#allocation2 + $0x120] sm:$0xff]  }
  0x3e   : > { %1276 = vmatprep.subr.bf16.mxu1 %v1500_v0 }
  0x40   : > { %1293 = vmatpush3.bf16.msra.mxu0 %v1420_v17 }
  0x41   : > { %1277 = vmatpush3.bf16.msra.mxu1 %v1414_v11  ;;  %1294 = vmatprep.subr.bf16.mxu0 %v1500_v0  ;;  %v1164_v11 = vld [vmem:[%s1731_s5 + $0x2] ss:$0 sm:$0xff] }
  0x42   : > { %1278 = vmatprep.subr.bf16.mxu1 %v1500_v0 }
  0x44   : > { %1295 = vmatpush3.bf16.msra.mxu0 %v1421_v18 }
  0x45   : > { %1279 = vmatpush3.bf16.msra.mxu1 %v1415_v12  ;;  %1296 = vmatprep.subr.bf16.mxu0 %v1500_v0 }
  0x46   : > { %1280 = vmatprep.subr.bf16.mxu1 %v1500_v0 }
  0x48   : > { %1297 = vmatpush3.bf16.msra.mxu0 %v1422_v29  ;;  %v1453_v29 = vld [vmem:[%s1729_s3 + $0x20] sm:$0xff]  }
  0x49   : > { %1281 = vmatpush3.bf16.msra.mxu1 %v1416_v13  ;;  %1298 = vmatprep.subr.bf16.mxu0 %v1500_v0 }
  0x4a   : > { %1306 = vmatprep.subr.bf16.mxu1 %v1500_v0 }
  0x4c   : > { %1299 = vmatpush3.bf16.msra.mxu0 %v1423_v30  ;;  %v1174_v30 = vld [vmem:[%s1731_s5 + $0x3] ss:$0 sm:$0xff] }
  0x4d   : > { %1300 = vmatprep.subr.bf16.mxu0 %v1500_v0 }
  0x50   : > { %1301 = vmatpush3.bf16.msra.mxu0 %v1424_v31 }
  0x51   : > { %1326 = vmatprep.subr.bf16.mxu0 %v1500_v0 }
 0x106   : > { %v352_v20 = vpop.f32.mrb[0].mxu0 }
 0x107   : > { %v1264_v21 = vpop.f32.mrb[1].mxu0  ;;  %v353_v23 = vadd.f32 %v1142_v19, %v352_v20 }
 0x108   : > { %v355_v22 = vpop.f32.mrb[2].mxu0 }
 0x109   : > { %v356_v24 = vadd.f32 %v1142_v19, %v355_v22  ;;  %v1265_v25 = vpop.f32.mrb[3].mxu0  ;;  %v1446_v22 = vld [vmem:[#allocation2 + $0x128] sm:$0xff]  }
 0x10a   : > { %v1449_v25 = vld [vmem:[%s1729_s3] sm:$0xff]  }
 0x10b   : > { %v359_v26 = vpack.c.bf16 %v356_v24, %v353_v23  ;;  %v1447_v23 = vld [vmem:[#allocation2 + $0x130] sm:$0xff]   ;;  %v1448_v24 = vld [vmem:[#allocation2 + $0x138] sm:$0xff]  }
 0x10d   : > { %v360_v27 = vmul.bf16 1036860877, %v359_v26 }
 0x10f   : > { %v361_v28 = vmax.bf16 %v360_v27, %v359_v26  ;;  %v1451_v27 = vld [vmem:[%s1729_s3 + $0x10] sm:$0xff]  }
 0x111   : > { %1283 = vmatmul.mubr.bf16.vlgmr.msra.gmra.mrb[0].mxu1 %v361_v28  ;;  %v1452_v28 = vld [vmem:[%s1729_s3 + $0x18] sm:$0xff]  }
 0x112   : > { %1322 = vmatprep.mubr.msk.bf16.mxu1 %vm1501_vm0, %v1500_v0  ;;  %1307 = vmatpush3.bf16.msra.mxu1 %v1425_v32 }
 0x113   : > { %1308 = vmatprep.subr.bf16.mxu1 %v1500_v0 }
 0x116   : > { %1309 = vmatpush3.bf16.msra.mxu1 %v1426_v33 }
 0x117   : > { %1310 = vmatprep.subr.bf16.mxu1 %v1500_v0 }
 0x11a   : > { %1311 = vmatpush3.bf16.msra.mxu1 %v1427_v34 }
 0x11b   : > { %1312 = vmatprep.subr.bf16.mxu1 %v1500_v0 }
 0x11e   : > { %1313 = vmatpush3.bf16.msra.mxu1 %v1428_v35 }
 0x11f   : > { %1314 = vmatprep.subr.bf16.mxu1 %v1500_v0 }
 0x122   : > { %1315 = vmatpush3.bf16.msra.mxu1 %v1429_v36 }
 0x123   : > { %1316 = vmatprep.subr.bf16.mxu1 %v1500_v0 }
 0x126   : > { %1317 = vmatpush3.bf16.msra.mxu1 %v1430_v48 }
 0x127   : > { %1318 = vmatprep.subr.bf16.mxu1 %v1500_v0 }
 0x12a   : > { %1319 = vmatpush3.bf16.msra.mxu1 %v1431_v49 }
 0x12b   : > { %1320 = vmatprep.subr.bf16.mxu1 %v1500_v0 }
 0x12e   : > { %1321 = vmatpush3.bf16.msra.mxu1 %v1432_v50 }
 0x12f   : > { %1346 = vmatprep.subr.bf16.mxu1 %v1500_v0 }
 0x1e4   : > { %v467_v38 = vpop.f32.mrb[0].mxu1 }
 0x1e5   : > { %v1284_v39 = vpop.f32.mrb[1].mxu1  ;;  %v468_v41 = vadd.f32 %v1144_v37, %v467_v38 }
 0x1e6   : > { %v470_v40 = vpop.f32.mrb[2].mxu1 }
 0x1e7   : > { %v471_v42 = vadd.f32 %v1144_v37, %v470_v40  ;;  %v1285_v43 = vpop.f32.mrb[3].mxu1 }
 0x1e8   : > { %v1456_v43 = vld [vmem:[%s1729_s3 + $0x38] sm:$0xff]  }
 0x1e9   : > { %v474_v44 = vpack.c.bf16 %v471_v42, %v468_v41  ;;  %v1454_v41 = vld [vmem:[%s1729_s3 + $0x28] sm:$0xff]   ;;  %v1455_v42 = vld [vmem:[%s1729_s3 + $0x30] sm:$0xff]  }
 0x1eb   : > { %v475_v45 = vadd.bf16 %v474_v44, %v359_v26  ;;  %v1450_v26 = vld [vmem:[%s1729_s3 + $0x8] sm:$0xff]   ;;  %v1184_v44 = vld [vmem:[%s1731_s5 + $0x4] ss:$0 sm:$0xff] }
 0x1ed   : > { %v476_v46 = vmul.bf16 1036860877, %v475_v45 }
 0x1ef   : > { %v1642_v47 = vmax.bf16 %v476_v46, %v475_v45 }
 0x1f1   : > { %1303 = vmatmul.mubr.bf16.vlgmr.msra.gmra.mrb[4].mxu0 %v1642_v47 }
 0x1f2   : > { %1342 = vmatprep.mubr.msk.bf16.mxu0 %vm1501_vm0, %v1500_v0  ;;  %1327 = vmatpush3.bf16.msra.mxu0 %v1433_v51 }
 0x1f3   : > { %1328 = vmatprep.subr.bf16.mxu0 %v1500_v0 }
 0x1f6   : > { %1329 = vmatpush3.bf16.msra.mxu0 %v1434_v52 }
 0x1f7   : > { %1330 = vmatprep.subr.bf16.mxu0 %v1500_v0 }
 0x1fa   : > { %1331 = vmatpush3.bf16.msra.mxu0 %v1435_v53 }
 0x1fb   : > { %1332 = vmatprep.subr.bf16.mxu0 %v1500_v0 }
 0x1fe   : > { %1333 = vmatpush3.bf16.msra.mxu0 %v1436_v54  ;;  %v1193_v54 = vld [vmem:[%s1732_s6] ss:$0 sm:$0xff] }
 0x1ff   : > { %1334 = vmatprep.subr.bf16.mxu0 %v1500_v0 }
 0x202   : > { %1335 = vmatpush3.bf16.msra.mxu0 %v1437_v55 }
 0x203   : > { %1336 = vmatprep.subr.bf16.mxu0 %v1500_v0 }
 0x206   : > { %1337 = vmatpush3.bf16.msra.mxu0 %v1438_v3 }
 0x207   : > { %1338 = vmatprep.subr.bf16.mxu0 %v1500_v0 }
 0x20a   : > { %1339 = vmatpush3.bf16.msra.mxu0 %v1439_v4 }
 0x20b   : > { %1340 = vmatprep.subr.bf16.mxu0 %v1500_v0 }
 0x20e   : > { %1341 = vmatpush3.bf16.msra.mxu0 %v1440_v5 }
 0x20f   : > { %1366 = vmatprep.subr.bf16.mxu0 %v1500_v0 }
 0x2c4   : > { %v585_v57 = vpop.f32.mrb[4].mxu0 }
 0x2c5   : > { %v1304_v58 = vpop.f32.mrb[5].mxu0  ;;  %v586_v60 = vadd.f32 %v1154_v56, %v585_v57 }
 0x2c6   : > { %v588_v59 = vpop.f32.mrb[6].mxu0 }
 0x2c7   : > { %v589_v61 = vadd.f32 %v1154_v56, %v588_v59  ;;  %v1305_v62 = vpop.f32.mrb[7].mxu0 }
 0x2c9   : > { %v592_v63 = vpack.c.bf16 %v589_v61, %v586_v60 }
 0x2cb   : > { %v593_v1 = vmul.bf16 1036860877, %v592_v63 }
 0x2cd   : > { %v594_v2 = vmax.bf16 %v593_v1, %v592_v63 }
 0x2cf   : > { %1323 = vmatmul.mubr.bf16.vlgmr.msra.gmra.mrb[4].mxu1 %v594_v2 }
 0x2d0   : > { %1362 = vmatprep.mubr.msk.bf16.mxu1 %vm1501_vm0, %v1500_v0  ;;  %1347 = vmatpush3.bf16.msra.mxu1 %v1441_v6 }
 0x2d1   : > { %1348 = vmatprep.subr.bf16.mxu1 %v1500_v0 }
 0x2d4   : > { %1349 = vmatpush3.bf16.msra.mxu1 %v1442_v7 }
 0x2d5   : > { %1350 = vmatprep.subr.bf16.mxu1 %v1500_v0 }
 0x2d8   : > { %1351 = vmatpush3.bf16.msra.mxu1 %v1443_v8 }
 0x2d9   : > { %1352 = vmatprep.subr.bf16.mxu1 %v1500_v0 }
 0x2dc   : > { %1353 = vmatpush3.bf16.msra.mxu1 %v1444_v9 }
 0x2dd   : > { %1354 = vmatprep.subr.bf16.mxu1 %v1500_v0 }
 0x2e0   : > { %1355 = vmatpush3.bf16.msra.mxu1 %v1445_v10 }
 0x2e1   : > { %1356 = vmatprep.subr.bf16.mxu1 %v1500_v0 }
 0x2e4   : > { %1357 = vmatpush3.bf16.msra.mxu1 %v1446_v22 }
 0x2e5   : > { %1358 = vmatprep.subr.bf16.mxu1 %v1500_v0 }
 0x2e8   : > { %1359 = vmatpush3.bf16.msra.mxu1 %v1447_v23 }
 0x2e9   : > { %1360 = vmatprep.subr.bf16.mxu1 %v1500_v0 }
 0x2ec   : > { %1361 = vmatpush3.bf16.msra.mxu1 %v1448_v24 }
 0x3a2   : > { %v702_v12 = vpop.f32.mrb[4].mxu1 }
 0x3a3   : > { %v1324_v13 = vpop.f32.mrb[5].mxu1  ;;  %v703_v15 = vadd.f32 %v1164_v11, %v702_v12 }
 0x3a4   : > { %v705_v14 = vpop.f32.mrb[6].mxu1 }
 0x3a5   : > { %v706_v16 = vadd.f32 %v1164_v11, %v705_v14  ;;  %v1325_v17 = vpop.f32.mrb[7].mxu1 }
 0x3a7   : > { %v709_v18 = vpack.c.bf16 %v706_v16, %v703_v15 }
 0x3a9   : > { %v710_v19 = vadd.bf16 %v709_v18, %v1642_v47 }
 0x3ab   : > { %v711_v20 = vmul.bf16 1036860877, %v710_v19 }
 0x3ad   : > { %v712_v21 = vmax.bf16 %v711_v20, %v710_v19 }
 0x3af   : > { %1343 = vmatmul.mubr.bf16.vlgmr.msra.gmra.mrb[8].mxu0 %v712_v21 }
 0x3b0   : > { %1382 = vmatprep.mubr.msk.bf16.mxu0 %vm1501_vm0, %v1500_v0  ;;  %1367 = vmatpush3.bf16.msra.mxu0 %v1449_v25 }
 0x3b1   : > { %1368 = vmatprep.subr.bf16.mxu0 %v1500_v0 }
 0x3b4   : > { %1369 = vmatpush3.bf16.msra.mxu0 %v1450_v26 }
 0x3b5   : > { %1370 = vmatprep.subr.bf16.mxu0 %v1500_v0 }
 0x3b8   : > { %1371 = vmatpush3.bf16.msra.mxu0 %v1451_v27 }
 0x3b9   : > { %1372 = vmatprep.subr.bf16.mxu0 %v1500_v0 }
 0x3bc   : > { %1373 = vmatpush3.bf16.msra.mxu0 %v1452_v28 }
 0x3bd   : > { %1374 = vmatprep.subr.bf16.mxu0 %v1500_v0 }
 0x3c0   : > { %1375 = vmatpush3.bf16.msra.mxu0 %v1453_v29 }
 0x3c1   : > { %1376 = vmatprep.subr.bf16.mxu0 %v1500_v0 }
 0x3c4   : > { %1377 = vmatpush3.bf16.msra.mxu0 %v1454_v41 }
 0x3c5   : > { %1378 = vmatprep.subr.bf16.mxu0 %v1500_v0 }
 0x3c8   : > { %1379 = vmatpush3.bf16.msra.mxu0 %v1455_v42 }
 0x3c9   : > { %1380 = vmatprep.subr.bf16.mxu0 %v1500_v0 }
 0x3cc   : > { %1381 = vmatpush3.bf16.msra.mxu0 %v1456_v43 }
 0x482   : > { %v820_v31 = vpop.f32.mrb[8].mxu0 }
 0x483   : > { %v1344_v32 = vpop.f32.mrb[9].mxu0  ;;  %v821_v34 = vadd.f32 %v1174_v30, %v820_v31 }
 0x484   : > { %v823_v33 = vpop.f32.mrb[10].mxu0 }
 0x485   : > { %v824_v35 = vadd.f32 %v1174_v30, %v823_v33  ;;  %v1345_v36 = vpop.f32.mrb[11].mxu0 }
 0x487   : > { %v827_v37 = vpack.c.bf16 %v824_v35, %v821_v34 }
 0x489   : > { %v828_v38 = vadd.bf16 %v827_v37, %v712_v21 }
 0x48b   : > { %v829_v39 = vmul.bf16 1036860877, %v828_v38 }
 0x48d   : > { %v830_v40 = vmax.bf16 %v829_v39, %v828_v38 }
 0x48f   : > { %1363 = vmatmul.mubr.bf16.vlgmr.msra.gmra.mrb[8].mxu1 %v830_v40 }
 0x562   : > { %v938_v45 = vpop.f32.mrb[8].mxu1 }
 0x563   : > { %v1364_v46 = vpop.f32.mrb[9].mxu1  ;;  %v939_v48 = vadd.f32 %v1184_v44, %v938_v45 }
 0x564   : > { %v941_v47 = vpop.f32.mrb[10].mxu1 }
 0x565   : > { %v942_v49 = vadd.f32 %v1184_v44, %v941_v47  ;;  %v1365_v50 = vpop.f32.mrb[11].mxu1 }
 0x567   : > { %v945_v51 = vpack.c.bf16 %v942_v49, %v939_v48 }
 0x569   : > { %v946_v52 = vmul.bf16 1036860877, %v945_v51 }
 0x56b   : > { %v947_v53 = vmax.bf16 %v946_v52, %v945_v51 }
 0x56d   : > { %v948_v0 = vadd.bf16 %v947_v53, %v830_v40 }
 0x56f   : > { %1383 = vmatmul.mubr.bf16.vlgmr.msra.gmra.mrb[12].mxu0 %v948_v0 }
 0x642   : > { %v1054_v55 = vpop.f32.mrb[12].mxu0 }
 0x643   : > { %v1055_v56 = vadd.f32 %v1193_v54, %v1054_v55  ;;  %v1384_v57 = vpop.f32.mrb[13].mxu0 }
 0x644   : > { %v1057_v58 = vpop.f32.mrb[14].mxu0 }
 0x645   : > { %1061 = vst.msk [vmem:[%s295_s17] sm:$0xff] %vm310_vm2, %v1055_v56  ;;  %v1058_v59 = vadd.f32 %v1193_v54, %v1057_v58  ;;  %v1385_v60 = vpop.f32.mrb[15].mxu0 }
 0x647   : > { %1062 = vst.msk [vmem:[%s295_s17 + $0x8] sm:$0xff] %vm310_vm2, %v1058_v59 }
 0x648 PF: > { %s18_s24 = sadd.s32 1, %s1495_s24  }
 0x649   : > { %p15_p3 = scmp.ge.s32.totalorder %s18_s24, 4  }
 0x64b   :  { %17 = sbr.rel (!%p15_p3) target bundleno = 1 (0x1), region = 91 }
 0x652   :  { %1085 = vsyncpa [#allocation3], 1 }
 0x653   :  { %1087 = vsyncpa [#allocation3 + $0x1], 1 }

</bundles_post_ra>
